<compile_context>
chip_gen: v7x
topology: tpu7x:2x2x1
jax: 0.10.0
libtpu: 0.0.40
codegen_flags: <defaults>
</compile_context>

<pallas_src>
import jax
import jax.numpy as jnp
from jax import lax
from jax.experimental import pallas as pl
from jax.experimental.pallas import tpu as pltpu


def _round_up(x, m):
    return (x + m - 1) // m * m


# ---------------------------------------------------------------------------
# Pallas kernel: pointwise (1x1) conv == matmul over channels for one (TM, Cin)
# spatial tile per grid step; the result is written transposed as (E, TM) so
# the module's (B, E, HW) output layout comes straight out of the kernel.
# ---------------------------------------------------------------------------
def _pointwise_conv_kernel(x_ref, w_ref, b_ref, o_ref):
    # x_ref: (TM, Cinp) bf16 | w_ref: (Cinp, Ep) bf16 | b_ref: (1, Ep) f32
    # o_ref: (Ep, TM) f32
    acc = jnp.dot(x_ref[...], w_ref[...], preferred_element_type=jnp.float32)
    y = acc + b_ref[...]                  # bias add in f32
    o_ref[...] = y.T.astype(o_ref.dtype)  # (TM, Ep) -> (Ep, TM): XLU transpose in VMEM


def pointwise_conv(x, weight, bias, *, tm_target=512):
    """1x1 conv as a tiled Pallas matmul.

    x:      (B, HW, Cin) float32   (spatial index = h*Wf + w, NHWC-flattened)
    weight: (Cin, E)     float32
    bias:   (E,)         float32
    returns (B, E, HW)   float32   == features.view(B, embed_size, -1)
    """
    B, HW, Cin = x.shape
    E = weight.shape[1]

    # Lane/sublane-friendly padding: channels and embed to multiples of 128,
    # spatial tile TM a multiple of 128 (<= tm_target), HW padded to a tile
    # multiple so tiles never straddle a batch boundary.
    Cinp = _round_up(Cin, 128)
    Ep = _round_up(E, 128)
    TM = min(tm_target, _round_up(HW, 128))
    HWp = _round_up(HW, TM)
    n_m = HWp // TM

    xp = jnp.pad(x, ((0, 0), (0, HWp - HW), (0, Cinp - Cin))).astype(jnp.bfloat16)
    wp = jnp.pad(weight, ((0, Cinp - Cin), (0, Ep - E))).astype(jnp.bfloat16)
    bp = jnp.pad(bias, (0, Ep - E)).astype(jnp.float32).reshape(1, Ep)

    # Explicit VMEM budget (double-buffered x/out tiles + resident weight),
    # kept well under v7x's 64 MiB physical cap.
    x_tile_b = TM * Cinp * 2
    w_b = Cinp * Ep * 2
    o_tile_b = Ep * TM * 4
    vmem_limit = int(min(max(4 * (x_tile_b + w_b + o_tile_b), 16 << 20), 48 << 20))

    cost = pl.CostEstimate(
        flops=2 * B * HWp * Cinp * Ep,
        transcendentals=0,
        bytes_accessed=xp.size * 2 + wp.size * 2 + bp.size * 4 + B * Ep * HWp * 4,
    )

    out = pl.pallas_call(
        _pointwise_conv_kernel,
        out_shape=jax.ShapeDtypeStruct((B, Ep, HWp), jnp.float32),
        grid_spec=pltpu.PrefetchScalarGridSpec(
            num_scalar_prefetch=0,
            grid=(B, n_m),
            in_specs=[
                # streamed spatial tiles of x
                pl.BlockSpec((pl.Squeezed(), TM, Cinp), lambda b, m: (b, m, 0)),
                # weight / bias: constant block index -> stay VMEM-resident
                pl.BlockSpec((Cinp, Ep), lambda b, m: (0, 0)),
                pl.BlockSpec((1, Ep), lambda b, m: (0, 0)),
            ],
            out_specs=pl.BlockSpec((pl.Squeezed(), Ep, TM), lambda b, m: (b, 0, m)),
        ),
        compiler_params=pltpu.CompilerParams(
            dimension_semantics=("parallel", "parallel"),
            vmem_limit_bytes=vmem_limit,
        ),
        cost_estimate=cost,
    )(xp, wp, bp)

    # Drop the lane/tile padding (no-op when E and HW are already aligned).
    return out[:, :E, :HW]


# ---------------------------------------------------------------------------
# EncoderCNN forward
# ---------------------------------------------------------------------------
class EncoderCNNPallas:
    def __init__(self, embed_size, in_channels, trunk_channels, key):
        # TODO(synk): the pretrained ResNet-101 trunk (children[:-2]) is external
        # (torchvision weights); a deterministic strided-conv + ReLU stand-in
        # produces the (B, Hf, Wf, Cin) conv feature map instead.
        k1, k2, k3 = jax.random.split(key, 3)
        self.trunk_w = jax.random.normal(
            k1, (trunk_channels, in_channels, 3, 3), jnp.float32) * 0.1
        # self.linear[0] = Conv2d(trunk_channels, embed_size, kernel_size=1)
        self.lin_w = jax.random.normal(
            k2, (embed_size, trunk_channels, 1, 1), jnp.float32) * 0.05
        self.lin_b = jax.random.normal(k3, (embed_size,), jnp.float32) * 0.05
        self.embed_size = embed_size

    def _trunk(self, images):
        # images NCHW -> features NHWC directly (no standalone transpose later).
        y = lax.conv_general_dilated(
            images, self.trunk_w,
            window_strides=(4, 4), padding="SAME",
            dimension_numbers=("NCHW", "OIHW", "NHWC"))
        return jnp.maximum(y, 0.0)                      # (B, Hf, Wf, Cin)

    def __call__(self, images):
        # "with torch.no_grad()" -> inference only; Dropout2d is identity in eval.
        raw = self._trunk(images)                       # (B, Hf, Wf, Cin)
        B, Hf, Wf, Cin = raw.shape
        x = raw.reshape(B, Hf * Wf, Cin)                # free reshape: index = h*Wf + w
        w = self.lin_w.reshape(self.embed_size, Cin).T  # (Cin, E)
        return pointwise_conv(x, w, self.lin_b)         # (B, E, Hf*Wf)


# ---------------------------------------------------------------------------
# Reference (plain JAX, bf16-matched inputs) for correctness check
# ---------------------------------------------------------------------------
def reference_forward(model, images):
    raw = model._trunk(images)                          # (B, Hf, Wf, Cin)
    B, Hf, Wf, Cin = raw.shape
    # Match the kernel's bf16 input rounding; accumulate in f32.
    x = raw.reshape(B, Hf * Wf, Cin).astype(jnp.bfloat16).astype(jnp.float32)
    w = (model.lin_w.reshape(model.embed_size, Cin).T
         .astype(jnp.bfloat16).astype(jnp.float32))
    y = jnp.einsum("bmc,ce->bme", x, w, precision=lax.Precision.HIGHEST)
    y = y + model.lin_b[None, None, :]
    return jnp.transpose(y, (0, 2, 1))                  # (B, E, Hf*Wf)


if __name__ == "__main__":
    key = jax.random.PRNGKey(0)
    k_img, k_param = jax.random.split(key)

    B, C_in, H, W = 2, 4, 16, 16           # small synthetic "images"
    embed_size = 32
    trunk_channels = 64                     # stand-in for resnet.fc.in_features (2048)

    images = jax.random.normal(k_img, (B, C_in, H, W), jnp.float32)
    model = EncoderCNNPallas(embed_size, C_in, trunk_channels, k_param)

    out = jax.block_until_ready(model(images))          # (2, 32, 16)

    ref = jax.block_until_ready(reference_forward(model, images))
    assert out.shape == ref.shape, (out.shape, ref.shape)
    max_err = float(jnp.max(jnp.abs(out - ref)))
    assert jnp.allclose(out, ref, atol=1e-3, rtol=1e-3), max_err

    print("KERNEL_OK")
</pallas_src>

<mosaic_0001>
module attributes {stable_mosaic.version = 11 : i64} {
  func.func @_pointwise_conv_kernel(%arg0: i32, %arg1: i32, %arg2: memref<1x128x128xbf16, #tpu.memory_space<vmem>>, %arg3: memref<128x128xbf16, #tpu.memory_space<vmem>>, %arg4: memref<1x128xf32, #tpu.memory_space<vmem>>, %arg5: memref<1x128x128xf32, #tpu.memory_space<vmem>>) attributes {dimension_semantics = [#tpu.dimension_semantics<parallel>, #tpu.dimension_semantics<parallel>], iteration_bounds = array<i64: 2, 1>, scalar_prefetch = 0 : i64, scratch_operands = 0 : i64, tpu.core_type = #tpu.core_type<tc>, window_params = [{transform_indices = @transform_0, window_bounds = array<i64: 1, 128, 128>}, {pipeline_mode = #tpu.pipeline_mode<synchronous>, transform_indices = @transform_1, window_bounds = array<i64: 128, 128>}, {pipeline_mode = #tpu.pipeline_mode<synchronous>, transform_indices = @transform_2, window_bounds = array<i64: 1, 128>}, {transform_indices = @transform_3, window_bounds = array<i64: 1, 128, 128>}]} {
    %c0 = arith.constant 0 : index
    %c0_0 = arith.constant 0 : index
    %c0_1 = arith.constant 0 : index
    %0 = vector.load %arg2[%c0, %c0_0, %c0_1] : memref<1x128x128xbf16, #tpu.memory_space<vmem>>, vector<1x128x128xbf16>
    %1 = vector.shape_cast %0 : vector<1x128x128xbf16> to vector<128x128xbf16>
    %c0_2 = arith.constant 0 : index
    %c0_3 = arith.constant 0 : index
    %2 = vector.load %arg3[%c0_2, %c0_3] : memref<128x128xbf16, #tpu.memory_space<vmem>>, vector<128x128xbf16>
    %cst = arith.constant dense<0.000000e+00> : vector<128x128xf32>
    %3 = tpu.matmul %1, %2, %cst {dimension_numbers = #tpu.dot_dimension_numbers<[1], [0], [0], [1], [0, 0, 1, 1], [], []>} : vector<128x128xbf16>, vector<128x128xbf16>, vector<128x128xf32> -> vector<128x128xf32>
    %c0_4 = arith.constant 0 : index
    %c0_5 = arith.constant 0 : index
    %4 = vector.load %arg4[%c0_4, %c0_5] : memref<1x128xf32, #tpu.memory_space<vmem>>, vector<1x128xf32>
    %5 = vector.broadcast %4 : vector<1x128xf32> to vector<128x128xf32>
    %6 = arith.addf %3, %5 : vector<128x128xf32>
    %7 = tpu.transpose %6, [1, 0] : vector<128x128xf32> -> vector<128x128xf32>
    %c0_6 = arith.constant 0 : index
    %c0_7 = arith.constant 0 : index
    %c0_8 = arith.constant 0 : index
    %8 = vector.load %arg5[%c0_6, %c0_7, %c0_8] : memref<1x128x128xf32, #tpu.memory_space<vmem>>, vector<1x128x128xf32>
    %9 = vector.shape_cast %8 : vector<1x128x128xf32> to vector<128x128xf32>
    %10 = vector.shape_cast %7 : vector<128x128xf32> to vector<1x128x128xf32>
    tpu.vector_store %arg5[%c0_6, %c0_7, %c0_8], %10 {strides = array<i32>} : memref<1x128x128xf32, #tpu.memory_space<vmem>>, vector<1x128x128xf32>,
    return
  }
  func.func @transform_0(%arg0: i32, %arg1: i32) -> (i32, i32, i32) {
    %c0_i32 = arith.constant 0 : i32
    %c0_i32_0 = arith.constant 0 : i32
    return %arg0, %arg1, %c0_i32 : i32, i32, i32
  }
  func.func @transform_1(%arg0: i32, %arg1: i32) -> (i32, i32) {
    %c0_i32 = arith.constant 0 : i32
    %c0_i32_0 = arith.constant 0 : i32
    %c0_i32_1 = arith.constant 0 : i32
    return %c0_i32, %c0_i32_0 : i32, i32
  }
  func.func @transform_2(%arg0: i32, %arg1: i32) -> (i32, i32) {
    %c0_i32 = arith.constant 0 : i32
    %c0_i32_0 = arith.constant 0 : i32
    %c0_i32_1 = arith.constant 0 : i32
    return %c0_i32, %c0_i32_0 : i32, i32
  }
  func.func @transform_3(%arg0: i32, %arg1: i32) -> (i32, i32, i32) {
    %c0_i32 = arith.constant 0 : i32
    %c0_i32_0 = arith.constant 0 : i32
    return %arg0, %c0_i32, %arg1 : i32, i32, i32
  }
}

</mosaic_0001>

<bundles_post_ra>
// kernel: tpu_custom_call.1
= control target key start
LH: loop header
LB: loop body
LE: loop exit
PB: predicated region body
PF: predicated region fallthrough
CT: control target
= control target key end

     0   :  { %8 = vsyncpa [#allocation3], 0  ;;  %s1239_s0 = inlined_call_operand.hbm [shape: bf16[2,128,128], index: 0, kind: input, shape index: {}]   ;;  %s1240_s1 = inlined_call_operand.hbm [shape: bf16[128,128], index: 1, kind: input, shape index: {}]   ;;  %s1241_s2 = inlined_call_operand.vmem [shape: f32[1,128], index: 2, kind: input, shape index: {}]   ;;  %s1242_s3 = inlined_call_operand.hbm [shape: f32[2,128,128], index: 3, kind: output, shape index: {}]  }
   0x1   :  { %10 = vsyncpa [#allocation3 + $0x1], 0 }
   0x2   :  { %11 = vsyncpa [#allocation6], 0 }
   0x3   :  { %12 = vsyncpa [#allocation4], 0 }
   0x4   :  { %14 = vsyncpa [#allocation4 + $0x1], 0  ;;  %s981_s12 = smov 0   ;;  %s983_s13 = smov 0  }
   0x5   :  { %s985_s14 = smov 0   ;;  %s987_s15 = smov 0  }
   0x6   :  { %s989_s16 = smov 0   ;;  %s991_s17 = smov 0  }
   0x7 LB: > { %s615_s18 = sadd.s32 4294967295, %s952_s17   ;;  %s616_s19 = sadd.s32 4294967294, %s952_s17   ;;  %s952_s17 = sphi %s991_s17, %s20_s17   ;;  %s948_s16 = sphi %s989_s16, %s1266_s16   ;;  %s944_s15 = sphi %s987_s15, %s1265_s15   ;;  %s940_s14 = sphi %s985_s14, %s1264_s14   ;;  %s936_s13 = sphi %s983_s13, %s1263_s13   ;;  %s932_s12 = sphi %s981_s12, %s1262_s12  }
   0x8   : > { %p54_p0 = scmp.ne.s32.totalorder %s936_s13, %s932_s12  ;;  %p1015_p1 = scmp.eq.s32.totalorder %s615_s18, 0 }
   0x9   : > { %p1019_p2 = scmp.eq.s32.totalorder %s615_s18, 1  ;;  %p128_p3 = scmp.eq.s32.totalorder %s616_s19, 1 }
   0xa   : > { %s1247_s20 = scalar_select %p1015_p1, 1, 0 }
   0xb   : > { %s1248_s21 = scalar_select %p1019_p2, 1, 0 }
   0xc   : > { %p1025_p4 = por %p1015_p1, %p54_p0  ;;  %p617_p5 = scmp.ge.s32.totalorder %s952_s17, 1 }
   0xd   : > { %p1030_p6 = por %p128_p3, %p54_p0  ;;  %p135_p7 = scmp.lt.s32.totalorder %s952_s17, 3 }
   0xe   : > { %s1249_s22 = scalar_select %p1025_p4, 1, 0 }
   0xf   : > { %s1250_s23 = scalar_select %p1030_p6, 1, 0 }
  0x10   : > { %p1035_p8 = pnand %p617_p5, %p135_p7  ;;  %s954_s25 = smov [#allocation5]  }
  0x11   : > { %s147_s26 = sshll.u32 %s954_s25, 4  ;;  %s32_s28 = sadd.s32 1, %s948_s16  ;;  %s148_s26 = int_to_ptr.vmem [resolvable:$true] %s147_s26 }
  0x12   : > { %s1251_s24 = scalar_select %p1035_p8, 1, 0 }
  0x13   : > { %p723_p9 = pneg %p1035_p8  ;;  %s808_s4 = scalar_lea.hbm %s1240_s1, 1024 }
  0x14   : > { %p809_p12 = scmp.ne.s32.totalorder %s1240_s1, %s808_s4  ;;  %p815_p5 = scmp.lt.u32.totalorder %s808_s4, %s1240_s1 }
  0x15   : > { %p1044_p11 = pnand %p723_p9, %p1015_p1 }
  0x17   : > { %p810_p13 = pneg %p1044_p11 }
  0x19   : > { %p811_p0 = pnand %p810_p13, %p809_p12 }
  0x1b   : > { %p812_p3 = pneg %p811_p0 }
  0x1d   : > { %p817_p7 = pnand %p815_p5, %p812_p3 }
  0x1f   : > { %820 = shalt.err (!%p817_p7)
}
  0x20   : > { %s821_s9 = scalar_lea.vmem %s148_s26, 1024  ;;  %p829_p1 = scmp.lt.s32.totalorder %s148_s26, %s148_s26 }
  0x21   : > { %p822_p9 = scmp.ne.s32.totalorder %s148_s26, %s821_s9  ;;  %p830_p4 = scmp.lt.s32.totalorder %s821_s9, %s821_s9 }
  0x23   : > { %p824_p10 = pnand %p822_p9, %p810_p13  ;;  %p831_p8 = por %p830_p4, %p829_p1 }
  0x25   : > { %p825_p6 = pneg %p824_p10 }
  0x27   : > { %p832_p2 = pnand %p831_p8, %p825_p6 }
  0x29   : > { %835 = shalt.err (!%p832_p2)
}
  0x2a   : > { %s955_s10 = smov 64   ;;  %s956_s11 = smov 4  }
  0x2b   : > { %726 = dma.hbm_to_vmem [thread:$0]  (!%p1044_p11), %s1240_s1, 1024, %s148_s26, [#allocation6], %s955_s10, %s955_s10, %s956_s11  }
  0x2c   : > { %p34_p1 = scmp.ge.s32.totalorder %s32_s28, 2  ;;  %s41_s25 = sadd.s32 1, %s940_s14 }
  0x2d   : > { %p48_p2 = scmp.ne.s32.totalorder %s940_s14, %s936_s13  ;;  %p49_p4 = scmp.eq.s32.totalorder %s952_s17, 0 }
  0x2e   : > { %s1268_s28 = smov (%p34_p1, %s32_s28), 0  ;;  %p1254_p8 = scmp.ne.s32.totalorder %s1248_s21, 0 }
  0x2f   : > { %p1074_p6 = por %p49_p4, %p48_p2  ;;  %s36_s30 = ssub.s32 %s948_s16, %s1268_s28 }
  0x30   : > { %p1080_p10 = por %p1254_p8, %p48_p2  ;;  %p736_p12 = scmp.lt.s32.totalorder %s952_s17, 2 }
  0x31   : > { %p39_p11 = scmp.eq.s32.totalorder %s36_s30, 0  ;;  %s164_s26 = sand.u32 1, %s940_s14  }
  0x32   : > { %s620_s4 = sshll.u32 %s164_s26, 6  ;;  %s649_s6 = sshll.u32 %s948_s16, 10 }
  0x33   : > { %s1089_s5 = scalar_select %p39_p11, %s940_s14, %s41_s25  }
  0x34   : > { %s1095_s9 = scalar_lea.hbm %s1239_s0, %s649_s6  ;;  %s168_s21 = scalar_lea.vmem [#allocation2], %s620_s4 }
  0x35   : > { %s177_s18 = sshll.u32 %s168_s21, 4  ;;  %p1101_p13 = pnand %p736_p12, %p1074_p6  ;;  %s1097_s18 = int_to_ptr.vmem [resolvable:$true] %s177_s18 }
  0x36   : > { %s1105_s25 = scalar_lea.sflag [#allocation3], %s164_s26  ;;  %s836_s30 = scalar_lea.hbm %s1095_s9, 1024 }
  0x37   : > { %p837_p0 = scmp.ne.s32.totalorder %s1095_s9, %s836_s30  ;;  %p838_p3 = pneg %p1101_p13 }
  0x38   : > { %s841_s29 = scalar_lea.hbm %s1239_s0, 2048  ;;  %p842_p9 = scmp.lt.u32.totalorder %s1095_s9, %s1239_s0 }
  0x39   : > { %p839_p5 = pnand %p838_p3, %p837_p0  ;;  %p843_p1 = scmp.lt.u32.totalorder %s841_s29, %s836_s30 }
  0x3a   : > { %p845_p4 = scmp.lt.u32.totalorder %s836_s30, %s1095_s9 }
  0x3b   : > { %p840_p7 = pneg %p839_p5  ;;  %p844_p2 = por %p843_p1, %p842_p9 }
  0x3d   : > { %p846_p6 = por %p845_p4, %p844_p2 }
  0x3f   : > { %p847_p8 = pnand %p846_p6, %p840_p7 }
  0x41   : > { %850 = shalt.err (!%p847_p8)
}
  0x42   : > { %s851_s26 = scalar_lea.vmem %s1097_s18, 1024  ;;  %s957_s21 = smov [#allocation2]  }
  0x43   : > { %p852_p12 = scmp.ne.s32.totalorder %s1097_s18, %s851_s26  ;;  %s856_s4 = sshll.u32 %s957_s21, 4  ;;  %s857_s4 = int_to_ptr.vmem [resolvable:$false] %s856_s4 }
  0x44   : > { %s858_s6 = scalar_lea.vmem %s857_s4, 2048  ;;  %p859_p5 = scmp.lt.s32.totalorder %s1097_s18, %s857_s4 }
  0x45   : > { %p854_p11 = pnand %p852_p12, %p838_p3  ;;  %p860_p9 = scmp.lt.s32.totalorder %s858_s6, %s851_s26 }
  0x47   : > { %p855_p0 = pneg %p854_p11  ;;  %p861_p1 = por %p860_p9, %p859_p5 }
  0x49   : > { %p862_p2 = pnand %p861_p1, %p855_p0 }
  0x4b   : > { %865 = shalt.err (!%p862_p2)
}
  0x4c   : > { %730 = dma.hbm_to_vmem [thread:$0]  (!%p1101_p13), %s1095_s9, 1024, %s1097_s18, %s1105_s25, %s955_s10, %s955_s10, %s956_s11  }
  0x4d   : > { %p1257_p3 = scmp.ne.s32.totalorder %s1251_s24, 0 }
  0x4e   : > { %s1139_s30 = sand.u32 (!%p1257_p3), 1, %s936_s13   ;;  %p1258_p7 = scmp.ne.s32.totalorder (!%p1257_p3), %s1249_s22, 0 }
  0x4f   : > { %189 = sbr.rel (%p1257_p3) target bundleno = 542 (0x21e), region = 32  ;;  %s624_s29 = sshll.u32 (!%p1257_p3), %s1139_s30, 6 }
  0x50   : > { %s192_s7 = scalar_lea.sflag (!%p1257_p3), [#allocation3], %s1139_s30  ;;  %s1143_s8 = scalar_lea.vmem (!%p1257_p3), [#allocation2], %s624_s29 }
  0x56   : > { %919 = dma.done.wait (%p1258_p7), %s192_s7, 1024  }
  0x57   : > { %921 = vsyncadd (%p1258_p7), %s192_s7, 4294966272  ;;  %p1259_p13 = scmp.ne.s32.totalorder %s1247_s20, 0 }
  0x59   : > { %923 = dma.done.wait (%p1259_p13), [#allocation6], 1024  }
  0x5a   : > { %925 = vsyncadd (%p1259_p13), [#allocation6], 4294966272  ;;  %v792_v0 = vld [vmem:[#allocation5] sm:$0xff]   ;;  %v793_v1 = vld [vmem:[#allocation5 + $0x8] sm:$0xff]   ;;  %s626_s24 = sshll.u32 %s1139_s30, 7  ;;  %s650_s11 = sshll.u32 %s944_s15, 11 }
  0x5b   : > { %667 = vmatprep.subr.bf16.mxu0 %v792_v0  ;;  %699 = vmatprep.subr.bf16.mxu1 %v792_v0  ;;  %v794_v2 = vld [vmem:[#allocation5 + $0x10] sm:$0xff]   ;;  %v795_v3 = vld [vmem:[#allocation5 + $0x18] sm:$0xff]   ;;  %v800_v4 = vld [vmem:[%s1143_s8] sm:$0xff]   ;;  %s1165_s10 = scalar_lea.vmem [#allocation7], %s626_s24  ;;  %s1187_s25 = scalar_lea.hbm %s1242_s3, %s650_s11 }
  0x5c   : > { %668 = vmatpush3.bf16.msra.mxu0 %v792_v0  ;;  %707 = vmatpush3.bf16.msra.mxu1 %v792_v0  ;;  %v796_v5 = vld [vmem:[#allocation5 + $0x20] sm:$0xff]   ;;  %v797_v7 = vld [vmem:[#allocation5 + $0x28] sm:$0xff]   ;;  %v798_v8 = vld [vmem:[#allocation5 + $0x30] sm:$0xff]   ;;  %s519_s9 = sshll.u32 %s1165_s10, 4  ;;  %s505_s26 = scalar_lea.sflag [#allocation4], %s1139_s30  ;;  %s1189_s9 = int_to_ptr.vmem [resolvable:$true] %s519_s9 }
  0x5d   : > { %669 = vmatprep.subr.bf16.mxu0 %v793_v1  ;;  %700 = vmatprep.subr.bf16.mxu1 %v793_v1  ;;  %v804_v6 = vld [vmem:[%s1143_s8 + $0x20] sm:$0xff]   ;;  %v799_v9 = vld [vmem:[#allocation5 + $0x38] sm:$0xff]   ;;  %v801_v10 = vld [vmem:[%s1143_s8 + $0x8] sm:$0xff]   ;;  %s866_s21 = scalar_lea.vmem %s1189_s9, 2048  ;;  %s958_s15 = smov [#allocation7]  }
  0x5e   : > { %683 = vmatprep.mubr.bf16.mxu0 %v800_v4  ;;  %691 = vmatprep.mubr.bf16.mxu1 %v804_v6  ;;  %v805_v11 = vld [vmem:[%s1143_s8 + $0x28] sm:$0xff]   ;;  %v802_v12 = vld [vmem:[%s1143_s8 + $0x10] sm:$0xff]   ;;  %v803_v14 = vld [vmem:[%s1143_s8 + $0x18] sm:$0xff]   ;;  %p867_p4 = scmp.ne.s32.totalorder %s1189_s9, %s866_s21  ;;  %s870_s4 = sshll.u32 %s958_s15, 4  ;;  %s871_s4 = int_to_ptr.vmem [resolvable:$false] %s870_s4 }
  0x5f   : > { %v806_v13 = vld [vmem:[%s1143_s8 + $0x30] sm:$0xff]   ;;  %v807_v15 = vld [vmem:[%s1143_s8 + $0x38] sm:$0xff]   ;;  %v627_v16 = vld [vmem:[%s1241_s2] ss:$0 sm:$0xff]  ;;  %s872_s6 = scalar_lea.vmem %s871_s4, 4096  ;;  %p873_p12 = scmp.lt.s32.totalorder %s1189_s9, %s871_s4 }
  0x60   : > { %670 = vmatpush3.bf16.msra.mxu0 %v793_v1  ;;  %708 = vmatpush3.bf16.msra.mxu1 %v793_v1  ;;  %p868_p6 = pnand %p867_p4, %p1080_p10  ;;  %p874_p11 = scmp.lt.s32.totalorder %s872_s6, %s866_s21 }
  0x61   : > { %671 = vmatprep.subr.bf16.mxu0 %v794_v2  ;;  %701 = vmatprep.subr.bf16.mxu1 %v794_v2 }
  0x62   : > { %p869_p8 = pneg %p868_p6  ;;  %p875_p0 = por %p874_p11, %p873_p12 }
  0x64   : > { %672 = vmatpush3.bf16.msra.mxu0 %v794_v2  ;;  %709 = vmatpush3.bf16.msra.mxu1 %v794_v2  ;;  %p876_p5 = pnand %p875_p0, %p869_p8 }
  0x65   : > { %673 = vmatprep.subr.bf16.mxu0 %v795_v3  ;;  %702 = vmatprep.subr.bf16.mxu1 %v795_v3 }
  0x68   : > { %674 = vmatpush3.bf16.msra.mxu0 %v795_v3  ;;  %710 = vmatpush3.bf16.msra.mxu1 %v795_v3 }
  0x69   : > { %675 = vmatprep.subr.bf16.mxu0 %v796_v5  ;;  %703 = vmatprep.subr.bf16.mxu1 %v796_v5 }
  0x6c   : > { %676 = vmatpush3.bf16.msra.mxu0 %v796_v5  ;;  %711 = vmatpush3.bf16.msra.mxu1 %v796_v5 }
  0x6d   : > { %677 = vmatprep.subr.bf16.mxu0 %v797_v7  ;;  %704 = vmatprep.subr.bf16.mxu1 %v797_v7 }
  0x70   : > { %678 = vmatpush3.bf16.msra.mxu0 %v797_v7  ;;  %712 = vmatpush3.bf16.msra.mxu1 %v797_v7 }
  0x71   : > { %679 = vmatprep.subr.bf16.mxu0 %v798_v8  ;;  %705 = vmatprep.subr.bf16.mxu1 %v798_v8 }
  0x74   : > { %680 = vmatpush3.bf16.msra.mxu0 %v798_v8  ;;  %713 = vmatpush3.bf16.msra.mxu1 %v798_v8 }
  0x75   : > { %681 = vmatprep.subr.bf16.mxu0 %v799_v9  ;;  %706 = vmatprep.subr.bf16.mxu1 %v799_v9 }
  0x78   : > { %682 = vmatpush3.bf16.msra.mxu0 %v799_v9  ;;  %714 = vmatpush3.bf16.msra.mxu1 %v799_v9 }
  0x7b   : > { %684 = vmatmul.mubr.bf16.vlgmr.msra.gmra.mrb[0].mxu0 %v801_v10  ;;  %692 = vmatmul.mubr.bf16.vlgmr.msra.gmra.mrb[0].mxu1 %v805_v11 }
  0x7c   : > { %687 = vmatprep.mubr.bf16.mxu0 %v802_v12  ;;  %695 = vmatprep.mubr.bf16.mxu1 %v806_v13 }
  0x83   : > { %688 = vmatmul.mubr.bf16.gmra.mrb[4].mxu0 %v803_v14  ;;  %696 = vmatmul.mubr.bf16.gmra.mrb[4].mxu1 %v807_v15 }
 0x14e   : > { %v685_v17 = vpop.f32.mrb[0].mxu0  ;;  %v693_v18 = vpop.f32.mrb[0].mxu1 }
 0x14f   : > { %v393_v19 = vpop.f32.mrb[1].mxu0  ;;  %v425_v20 = vpop.f32.mrb[1].mxu1  ;;  %v402_v31 = vadd.f32 %v685_v17, %v627_v16  ;;  %v434_v43 = vadd.f32 %v693_v18, %v627_v16 }
 0x150   : > { %v686_v21 = vpop.f32.mrb[2].mxu0  ;;  %v394_v22 = vadd.f32 %v627_v16, %v393_v19  ;;  %v694_v23 = vpop.f32.mrb[2].mxu1  ;;  %v426_v41 = vadd.f32 %v627_v16, %v425_v20 }
 0x151   : > { %v396_v24 = vpop.f32.mrb[3].mxu0  ;;  %v428_v25 = vpop.f32.mrb[3].mxu1  ;;  %v405_v36 = vadd.f32 %v686_v21, %v627_v16  ;;  %v437_v44 = vadd.f32 %v694_v23, %v627_v16 }
 0x152   : > { %456 = vxpose.xlu0.b32.start [1/16] %v394_v22, 128  ;;  %v397_v26 = vadd.f32 %v627_v16, %v396_v24  ;;  %v429_v42 = vadd.f32 %v627_v16, %v428_v25 }
 0x156   : > { %457 = vxpose.xlu0.b32.cont [2/16] %v397_v26, 128  ;;  %v689_v27 = vpop.f32.mrb[4].mxu0  ;;  %v697_v28 = vpop.f32.mrb[4].mxu1 }
 0x157   : > { %v409_v29 = vpop.f32.mrb[5].mxu0  ;;  %v441_v30 = vpop.f32.mrb[5].mxu1  ;;  %v418_v39 = vadd.f32 %v689_v27, %v627_v16  ;;  %v450_v47 = vadd.f32 %v697_v28, %v627_v16 }
 0x158   : > { %v690_v32 = vpop.f32.mrb[6].mxu0  ;;  %v698_v33 = vpop.f32.mrb[6].mxu1  ;;  %v410_v37 = vadd.f32 %v627_v16, %v409_v29  ;;  %v442_v45 = vadd.f32 %v627_v16, %v441_v30 }
 0x159   : > { %v412_v34 = vpop.f32.mrb[7].mxu0  ;;  %v444_v35 = vpop.f32.mrb[7].mxu1  ;;  %v421_v40 = vadd.f32 %v690_v32, %v627_v16  ;;  %v453_v48 = vadd.f32 %v698_v33, %v627_v16 }
 0x15a   : > { %458 = vxpose.xlu0.b32.cont [3/16] %v402_v31, 128  ;;  %v413_v38 = vadd.f32 %v627_v16, %v412_v34  ;;  %v445_v46 = vadd.f32 %v627_v16, %v444_v35 }
 0x15e   : > { %459 = vxpose.xlu0.b32.cont [4/16] %v405_v36, 128 }
 0x162   : > { %460 = vxpose.xlu0.b32.cont [5/16] %v410_v37, 128 }
 0x166   : > { %461 = vxpose.xlu0.b32.cont [6/16] %v413_v38, 128 }
 0x16a   : > { %462 = vxpose.xlu0.b32.cont [7/16] %v418_v39, 128 }
 0x16e   : > { %463 = vxpose.xlu0.b32.cont [8/16] %v421_v40, 128 }
 0x172   : > { %464 = vxpose.xlu0.b32.cont [9/16] %v426_v41, 128 }
 0x176   : > { %465 = vxpose.xlu0.b32.cont [10/16] %v429_v42, 128 }
 0x17a   : > { %466 = vxpose.xlu0.b32.cont [11/16] %v434_v43, 128 }
 0x17e   : > { %467 = vxpose.xlu0.b32.cont [12/16] %v437_v44, 128 }
 0x182   : > { %468 = vxpose.xlu0.b32.cont [13/16] %v442_v45, 128 }
 0x186   : > { %469 = vxpose.xlu0.b32.cont [14/16] %v445_v46, 128 }
 0x18a   : > { %470 = vxpose.xlu0.b32.cont [15/16] %v450_v47, 128 }
 0x18e   : > { %471 = vxpose.xlu0.b32.end [16/16] %v453_v48, 128 }
 0x1d2   : > { %v472_v49 = vpop.trf.xlu0 }
 0x1d3   : > { %488 = vst [vmem:[%s1165_s10] sm:$0xff] %v472_v49 }
 0x1d6   : > { %v473_v50 = vpop.trf.xlu0 }
 0x1d7   : > { %489 = vst [vmem:[%s1165_s10 + $0x8] sm:$0xff] %v473_v50 }
 0x1da   : > { %v474_v51 = vpop.trf.xlu0 }
 0x1db   : > { %490 = vst [vmem:[%s1165_s10 + $0x10] sm:$0xff] %v474_v51 }
 0x1de   : > { %v475_v52 = vpop.trf.xlu0 }
 0x1df   : > { %491 = vst [vmem:[%s1165_s10 + $0x18] sm:$0xff] %v475_v52 }
 0x1e2   : > { %v476_v53 = vpop.trf.xlu0 }
 0x1e3   : > { %492 = vst [vmem:[%s1165_s10 + $0x20] sm:$0xff] %v476_v53 }
 0x1e6   : > { %v477_v54 = vpop.trf.xlu0 }
 0x1e7   : > { %493 = vst [vmem:[%s1165_s10 + $0x28] sm:$0xff] %v477_v54 }
 0x1ea   : > { %v478_v55 = vpop.trf.xlu0 }
 0x1eb   : > { %494 = vst [vmem:[%s1165_s10 + $0x30] sm:$0xff] %v478_v55 }
 0x1ee   : > { %v479_v56 = vpop.trf.xlu0 }
 0x1ef   : > { %495 = vst [vmem:[%s1165_s10 + $0x38] sm:$0xff] %v479_v56 }
 0x1f2   : > { %v480_v57 = vpop.trf.xlu0 }
 0x1f3   : > { %496 = vst [vmem:[%s1165_s10 + $0x40] sm:$0xff] %v480_v57 }
 0x1f6   : > { %v481_v58 = vpop.trf.xlu0 }
 0x1f7   : > { %497 = vst [vmem:[%s1165_s10 + $0x48] sm:$0xff] %v481_v58 }
 0x1fa   : > { %v482_v59 = vpop.trf.xlu0 }
 0x1fb   : > { %498 = vst [vmem:[%s1165_s10 + $0x50] sm:$0xff] %v482_v59 }
 0x1fe   : > { %v483_v60 = vpop.trf.xlu0 }
 0x1ff   : > { %499 = vst [vmem:[%s1165_s10 + $0x58] sm:$0xff] %v483_v60 }
 0x202   : > { %v484_v61 = vpop.trf.xlu0 }
 0x203   : > { %500 = vst [vmem:[%s1165_s10 + $0x60] sm:$0xff] %v484_v61 }
 0x206   : > { %v485_v62 = vpop.trf.xlu0 }
 0x207   : > { %501 = vst [vmem:[%s1165_s10 + $0x68] sm:$0xff] %v485_v62 }
 0x20a   : > { %v486_v63 = vpop.trf.xlu0 }
 0x20b   : > { %502 = vst [vmem:[%s1165_s10 + $0x70] sm:$0xff] %v486_v63 }
 0x20e   : > { %v487_v0 = vpop.trf.xlu0 }
 0x20f   : > { %503 = vst [vmem:[%s1165_s10 + $0x78] sm:$0xff] %v487_v0 }
 0x210   : > { %879 = shalt.err (!%p876_p5)
}
 0x211   : > { %s880_s29 = scalar_lea.hbm %s1187_s25, 2048  ;;  %s884_s20 = scalar_lea.hbm %s1242_s3, 4096 }
 0x212   : > { %p881_p9 = scmp.ne.s32.totalorder %s1187_s25, %s880_s29  ;;  %p885_p3 = scmp.lt.u32.totalorder %s1187_s25, %s1242_s3 }
 0x213   : > { %p886_p7 = scmp.lt.u32.totalorder %s884_s20, %s880_s29  ;;  %p888_p4 = scmp.lt.u32.totalorder %s880_s29, %s1187_s25 }
 0x214   : > { %p882_p1 = pnand %p881_p9, %p1080_p10 }
 0x215   : > { %p887_p13 = por %p886_p7, %p885_p3 }
 0x216   : > { %p883_p2 = pneg %p882_p1 }
 0x217   : > { %p889_p6 = por %p888_p4, %p887_p13 }
 0x219   : > { %p890_p8 = pnand %p889_p6, %p883_p2 }
 0x21b   : > { %893 = shalt.err (!%p890_p8)
}
 0x21c   : > { %s959_s10 = smov 128   ;;  %s960_s11 = smov 8  }
 0x21d   : > { %721 = dma.vmem_to_hbm [thread:$0]  (%p1080_p10), %s1189_s9, 2048, %s1187_s25, %s505_s26, %s959_s10, %s959_s10, %s960_s11  }
 0x21e PF: > { %s534_s18 = sand.u32 1, %s932_s12   ;;  %p1260_p12 = scmp.ne.s32.totalorder %s1250_s23, 0 }
 0x21f   : > { %p1261_p11 = scmp.ge.s32.totalorder %s952_s17, 2  ;;  %s535_s19 = scalar_lea.sflag [#allocation4], %s534_s18 }
 0x221   : > { %p732_p0 = pnand %p1261_p11, %p1260_p12 }
 0x223   : > { %927 = dma.done.wait (!%p732_p0), %s535_s19, 2048  }
 0x224   : > { %929 = vsyncadd (!%p732_p0), %s535_s19, 4294965248  ;;  %s20_s17 = sadd.s32 1, %s952_s17   ;;  %s1262_s12 = smov %s936_s13 }
 0x225   : > { %p17_p5 = scmp.ge.s32.totalorder %s20_s17, 4   ;;  %s1263_s13 = smov %s940_s14 }
 0x226   : > { %s1264_s14 = smov %s1089_s5  ;;  %s1265_s15 = smov %s948_s16 }
 0x227   : > { %s1266_s16 = smov %s1268_s28  ;;  %19 = sbr.rel (!%p17_p5) target bundleno = 7 (0x7), region = 81 }
 0x22e   :  { %540 = vsyncpa [#allocation3], 1 }
 0x22f   :  { %542 = vsyncpa [#allocation3 + $0x1], 1 }
 0x230   :  { %543 = vsyncpa [#allocation6], 1 }
 0x231   :  { %544 = vsyncpa [#allocation4], 1 }
 0x232   :  { %546 = vsyncpa [#allocation4 + $0x1], 1 }

</bundles_post_ra>
